<compile_context>
chip_gen: v7x
topology: tpu7x:2x2x1
jax: 0.10.0
libtpu: 0.0.40
codegen_flags: <defaults>
</compile_context>

<pallas_src>
import functools

import jax
import jax.numpy as jnp
from jax.experimental import pallas as pl
from jax.experimental.pallas import tpu as pltpu


def _seq_mean_kernel(x_ref, o_ref, acc_ref, *, inv_seq_len, folds):
    """Streaming sum over sequence chunks; finalize to (scaled) mean on last step."""
    s = pl.program_id(1)
    x = x_ref[...].astype(jnp.float32)                      # (tb, seq_tile, D)

    if folds == 0:
        # Only reached when seq_tile == S (single seq step, S not 8-divisible):
        # reduce directly, no accumulator needed.
        total = jnp.sum(x, axis=1, keepdims=True)           # (tb, 1, D)
        o_ref[...] = (total * jnp.float32(inv_seq_len)).astype(o_ref.dtype)
        return

    @pl.when(s == 0)
    def _():
        acc_ref[...] = jnp.zeros_like(acc_ref)

    # (tb, seq_tile, D) -> (tb, folds, 8, D): splitting the sublane axis into
    # groups of 8 is layout-preserving; the axis-1 sum is pure elementwise VPU
    # adds (no cross-sublane XLU work in the steady-state loop).
    tb, _, d = x.shape
    acc_ref[...] += jnp.sum(x.reshape(tb, folds, 8, d), axis=1)

    @pl.when(s == pl.num_programs(1) - 1)
    def _():
        # Single cross-sublane reduce + scale, once per batch block.
        total = jnp.sum(acc_ref[...], axis=1, keepdims=True)  # (tb, 1, D)
        o_ref[...] = (total * jnp.float32(inv_seq_len)).astype(o_ref.dtype)


def _divisor_at_most_near(n, target):
    """Largest divisor of n in [target//2, target]; else target (partial block)."""
    for t in range(target, max(1, target // 2) - 1, -1):
        if n % t == 0:
            return t
    return target


def _pick_tiles(B, S, D, itemsize, target_block_bytes):
    """Choose (batch_tile, seq_tile) targeting ~target_block_bytes per block."""
    sub = max(8, 32 // itemsize)                 # sublane pack: f32->8, bf16->16
    row_bytes = D * itemsize
    # Sequence tile: divisor of S, multiple of `sub`, within budget; prefer a
    # grid of >= 4 seq steps so double-buffering actually overlaps DMA/compute.
    cands = [t for t in range(sub, S + 1, sub) if S % t == 0]
    if not cands:
        seq_tile = S                             # no clean divisor: one seq block
    else:
        fit = [t for t in cands if t * row_bytes <= target_block_bytes] or cands[:1]
        deep = [t for t in fit if S // t >= 4]
        seq_tile = max(deep) if deep else max(fit)
    # Batch tile: fill the remaining block budget; keep >= 2 batch blocks so the
    # "parallel" grid axis exists (v7x megacore); prefer a divisor of B.
    chunk = max(1, seq_tile * row_bytes)
    tb = max(1, min(B, target_block_bytes // chunk))
    if B >= 2:
        tb = min(tb, -(-B // 2))
    tb = _divisor_at_most_near(B, tb)
    return int(tb), int(seq_tile)


def _seq_mean_pallas(x, *, inv_seq_len, out_dtype,
                     batch_tile=None, seq_tile=None,
                     target_block_bytes=2 << 20):
    """Scaled sum over axis 1: (B, S, D) -> (B, D), value = inv_seq_len * sum_s x."""
    B, S, D = x.shape
    itemsize = jnp.dtype(x.dtype).itemsize
    sub = max(8, 32 // itemsize)

    auto_tb, auto_st = _pick_tiles(B, S, D, itemsize, target_block_bytes)
    tb = batch_tile if batch_tile is not None else auto_tb
    st = seq_tile if seq_tile is not None else auto_st
    tb = max(1, min(int(tb), B))
    st = max(1, min(int(st), S))
    # Enforce correctness (seq blocks must tile S exactly) and the TPU sublane
    # tiling rule (second-to-last block dim multiple of `sub`, or full extent).
    if S % st != 0 or (st != S and st % sub != 0):
        st = S
    folds = st // 8 if st % 8 == 0 else 0        # folds==0 implies st==S (ns==1)

    nb = pl.cdiv(B, tb)                          # batch axis ("parallel")
    ns = S // st                                 # reduction axis ("arbitrary")
    grid = (nb, ns)

    kernel = functools.partial(_seq_mean_kernel,
                               inv_seq_len=float(inv_seq_len), folds=folds)

    out3 = pl.pallas_call(
        kernel,
        out_shape=jax.ShapeDtypeStruct((B, 1, D), out_dtype),
        grid_spec=pltpu.PrefetchScalarGridSpec(
            num_scalar_prefetch=0,
            grid=grid,
            in_specs=[pl.BlockSpec((tb, st, D), lambda b, s: (b, s, 0))],
            out_specs=pl.BlockSpec((tb, 1, D), lambda b, s: (b, 0, 0)),
            scratch_shapes=[pltpu.VMEM((tb, 8, D), jnp.float32)],
        ),
        compiler_params=pltpu.CompilerParams(
            dimension_semantics=("parallel", "arbitrary"),
            # Headroom for double-buffered ~2 MiB input blocks everywhere
            # (v5e default scoped VMEM is only 16 MiB; 32 MiB is safe on v7x).
            vmem_limit_bytes=32 * 1024 * 1024,
        ),
        cost_estimate=pl.CostEstimate(
            flops=B * S * D,
            transcendentals=0,
            bytes_accessed=B * S * D * itemsize + B * D * itemsize,
        ),
    )(x)
    return out3.reshape(B, D)


def seq_aggregate(x, *, batch_tile=None, seq_tile=None,
                  target_block_bytes=2 << 20):
    """Mean over the sequence axis: (B, S, D) -> (B, D) as a Pallas reduction."""
    B, S, D = x.shape

    # Lane-densify small feature dims: (B, S, D) -> (B, S/r, r*D) is a pure
    # contiguous reshape (no data movement) that fills all 128 lanes, keeps the
    # HBM->VMEM DMA dense, and cuts the per-block VMEM footprint by r×.
    r = 1
    if D < 128 and 128 % D == 0:
        cand = 128 // D
        if S % cand == 0:
            r = cand

    if r == 1:
        return _seq_mean_pallas(x, inv_seq_len=1.0 / S, out_dtype=x.dtype,
                                batch_tile=batch_tile, seq_tile=seq_tile,
                                target_block_bytes=target_block_bytes)

    xf = x.reshape(B, S // r, r * D)
    # Kernel returns per-lane-group partial means in f32; fold the r groups in
    # the wrapper (tiny (B, r, D) reduce, negligible vs the streamed input).
    part = _seq_mean_pallas(xf, inv_seq_len=1.0 / S, out_dtype=jnp.float32,
                            batch_tile=batch_tile, seq_tile=seq_tile,
                            target_block_bytes=target_block_bytes)
    return jnp.sum(part.reshape(B, r, D), axis=1).astype(x.dtype)


class SeqAggregatorPallas:
    """JAX/Pallas analogue of SeqAggregator(gcn_dims).  No parameters."""

    # Below this many input bytes a standalone pallas_call's launch/per-step
    # overhead dwarfs the work; let XLA do it (and fuse with the producer).
    _MIN_PALLAS_BYTES = 256 * 1024

    def __init__(self, gcn_dims):
        self.input_dims = gcn_dims
        self.hidden_dims = gcn_dims

    def __call__(self, x):
        assert x.ndim == 3 and x.shape[-1] == self.input_dims
        if x.size * jnp.dtype(x.dtype).itemsize < self._MIN_PALLAS_BYTES:
            return jnp.mean(x, axis=1)           # tiny input: bypass the kernel
        return seq_aggregate(x)


if __name__ == "__main__":
    key = jax.random.PRNGKey(0)

    # Tiny shape consistent with the module (gcn_dims=32).
    B, S, gcn_dims = 2, 8, 32
    x_small = jax.random.normal(key, (B, S, gcn_dims), dtype=jnp.float32)

    agg = SeqAggregatorPallas(gcn_dims)
    out_module = jax.block_until_ready(agg(x_small))            # bypass path
    out_pallas = jax.block_until_ready(seq_aggregate(x_small))  # force the kernel
    ref_small = jnp.mean(x_small, axis=1)
    assert out_module.shape == (B, gcn_dims)
    assert out_pallas.shape == (B, gcn_dims)
    assert jnp.allclose(out_module, ref_small, atol=1e-5, rtol=1e-5)
    assert jnp.allclose(out_pallas, ref_small, atol=1e-5, rtol=1e-5)

    # Lane-dense D: exercises the multi-step pipelined grid
    # (parallel batch axis x multi-step sequence reduction).
    B2, S2, D2 = 4, 64, 128
    x_big = jax.random.normal(jax.random.PRNGKey(0), (B2, S2, D2),
                              dtype=jnp.float32)
    out_big = jax.block_until_ready(seq_aggregate(x_big))
    ref_big = jnp.mean(x_big, axis=1)
    assert out_big.shape == (B2, D2)
    assert jnp.allclose(out_big, ref_big, atol=1e-5, rtol=1e-5)

    # bf16 + small-D lane-fold path (D=32 -> r=4 fold to 128 lanes).
    B3, S3, D3 = 4, 64, 32
    x_bf = jax.random.normal(jax.random.PRNGKey(0), (B3, S3, D3),
                             dtype=jnp.float32).astype(jnp.bfloat16)
    out_bf = jax.block_until_ready(seq_aggregate(x_bf))
    ref_bf = jnp.mean(x_bf.astype(jnp.float32), axis=1)
    assert out_bf.shape == (B3, D3)
    assert jnp.allclose(out_bf.astype(jnp.float32), ref_bf, atol=2e-2, rtol=2e-2)

    print("KERNEL_OK")
</pallas_src>

<mosaic_0001>
module attributes {stable_mosaic.version = 11 : i64} {
  func.func @_seq_mean_kernel(%arg0: i32, %arg1: i32, %arg2: memref<1x2x128xf32, #tpu.memory_space<vmem>>, %arg3: memref<1x1x128xf32, #tpu.memory_space<vmem>>, %arg4: memref<1x8x128xf32, #tpu.memory_space<vmem>>) attributes {dimension_semantics = [#tpu.dimension_semantics<parallel>, #tpu.dimension_semantics<arbitrary>], iteration_bounds = array<i64: 2, 1>, scalar_prefetch = 0 : i64, scratch_operands = 1 : i64, tpu.core_type = #tpu.core_type<tc>, window_params = [{transform_indices = @transform_0, window_bounds = array<i64: 1, 2, 128>}, {transform_indices = @transform_1, window_bounds = array<i64: 1, 1, 128>}]} {
    %c0 = arith.constant 0 : index
    %c0_0 = arith.constant 0 : index
    %c0_1 = arith.constant 0 : index
    %0 = vector.load %arg2[%c0, %c0_0, %c0_1] : memref<1x2x128xf32, #tpu.memory_space<vmem>>, vector<1x2x128xf32>
    %cst = arith.constant dense<0.000000e+00> : vector<1x128xf32>
    %1 = vector.multi_reduction <add>, %0, %cst [1] : vector<1x2x128xf32> to vector<1x128xf32>
    %2 = vector.shape_cast %1 : vector<1x128xf32> to vector<1x1x128xf32>
    %cst_2 = arith.constant 1.250000e-01 : f32
    %3 = vector.broadcast %cst_2 : f32 to vector<1x1x128xf32>
    %4 = arith.mulf %2, %3 : vector<1x1x128xf32>
    %c0_3 = arith.constant 0 : index
    %c0_4 = arith.constant 0 : index
    %c0_5 = arith.constant 0 : index
    %5 = vector.load %arg3[%c0_3, %c0_4, %c0_5] : memref<1x1x128xf32, #tpu.memory_space<vmem>>, vector<1x1x128xf32>
    tpu.vector_store %arg3[%c0_3, %c0_4, %c0_5], %4 {strides = array<i32>} : memref<1x1x128xf32, #tpu.memory_space<vmem>>, vector<1x1x128xf32>,
    return
  }
  func.func @transform_0(%arg0: i32, %arg1: i32) -> (i32, i32, i32) {
    %c0_i32 = arith.constant 0 : i32
    %c0_i32_0 = arith.constant 0 : i32
    return %arg0, %arg1, %c0_i32 : i32, i32, i32
  }
  func.func @transform_1(%arg0: i32, %arg1: i32) -> (i32, i32, i32) {
    %c0_i32 = arith.constant 0 : i32
    %c0_i32_0 = arith.constant 0 : i32
    %c0_i32_1 = arith.constant 0 : i32
    return %arg0, %c0_i32, %c0_i32_0 : i32, i32, i32
  }
}

</mosaic_0001>

<bundles_post_ra>
// kernel: tpu_custom_call.1
= control target key start
LH: loop header
LB: loop body
LE: loop exit
PB: predicated region body
PF: predicated region fallthrough
CT: control target
= control target key end

     0   :  { %6 = vsyncpa [#allocation4], 0  ;;  %s614_s0 = inlined_call_operand.hbm [shape: f32[2,2,128], index: 0, kind: input, shape index: {}]   ;;  %s615_s1 = inlined_call_operand.hbm [shape: f32[2,1,128], index: 1, kind: output, shape index: {}]  }
   0x1   :  { %8 = vsyncpa [#allocation4 + $0x1], 0 }
   0x2   :  { %9 = vsyncpa [#allocation5], 0 }
   0x3   :  { %11 = vsyncpa [#allocation5 + $0x1], 0  ;;  %s441_s6 = smov 0   ;;  %s443_s7 = smov 0  }
   0x4   :  { %s445_s8 = smov 0   ;;  %s447_s9 = smov 0  }
   0x5   :  { %s449_s10 = smov 0   ;;  %s451_s11 = smov 0  }
   0x6 LB: > { %s242_s12 = sadd.s32 4294967295, %s427_s11   ;;  %s243_s13 = sadd.s32 4294967294, %s427_s11   ;;  %s427_s11 = sphi %s451_s11, %s17_s11   ;;  %s423_s10 = sphi %s449_s10, %s631_s10   ;;  %s419_s9 = sphi %s447_s9, %s630_s9   ;;  %s415_s8 = sphi %s445_s8, %s629_s8   ;;  %s411_s7 = sphi %s443_s7, %s628_s7   ;;  %s407_s6 = sphi %s441_s6, %s627_s6  }
   0x7   : > { %s29_s14 = sadd.s32 1, %s423_s10  ;;  %s38_s15 = sadd.s32 1, %s415_s8 }
   0x8   : > { %p31_p0 = scmp.ge.s32.totalorder %s29_s14, 2  ;;  %p45_p1 = scmp.ne.s32.totalorder %s415_s8, %s411_s7 }
   0x9   : > { %p46_p2 = scmp.eq.s32.totalorder %s427_s11, 0  ;;  %p51_p3 = scmp.ne.s32.totalorder %s411_s7, %s407_s6 }
   0xa   : > { %s633_s14 = smov (%p31_p0, %s29_s14), 0  ;;  %p52_p5 = scmp.eq.s32.totalorder %s242_s12, 0 }
   0xb   : > { %p482_p4 = por %p46_p2, %p45_p1  ;;  %s33_s17 = ssub.s32 %s423_s10, %s633_s14 }
   0xc   : > { %p75_p6 = scmp.eq.s32.totalorder %s242_s12, 1  ;;  %p36_p7 = scmp.eq.s32.totalorder %s33_s17, 0 }
   0xd   : > { %p488_p8 = por %p52_p5, %p51_p3  ;;  %p81_p10 = scmp.eq.s32.totalorder %s243_s13, 1 }
   0xe   : > { %p492_p9 = por %p75_p6, %p45_p1  ;;  %p265_p13 = scmp.lt.s32.totalorder %s427_s11, 2 }
   0xf   : > { %s497_s20 = scalar_select %p36_p7, %s415_s8, %s38_s15  }
  0x10   : > { %s619_s19 = scalar_select %p492_p9, 1, 0 }
  0x11   : > { %p499_p11 = por %p81_p10, %p51_p3  ;;  %s101_s22 = sand.u32 1, %s415_s8  }
  0x12   : > { %s246_s23 = sshll.u32 %s101_s22, 1  ;;  %s247_s24 = sshll.u32 %s423_s10, 5 }
  0x13   : > { %s620_s21 = scalar_select %p499_p11, 1, 0 }
  0x14   : > { %s510_s27 = scalar_lea.hbm %s614_s0, %s247_s24  ;;  %s105_s28 = scalar_lea.vmem [#allocation3], %s246_s23 }
  0x15   : > { %s113_s29 = sshll.u32 %s105_s28, 4  ;;  %p516_p0 = pnand %p265_p13, %p482_p4  ;;  %s512_s29 = int_to_ptr.vmem [resolvable:$true] %s113_s29 }
  0x16   : > { %s102_s2 = scalar_lea.sflag [#allocation4], %s101_s22  ;;  %s315_s3 = scalar_lea.hbm %s510_s27, 32 }
  0x17   : > { %p316_p3 = scmp.ne.s32.totalorder %s510_s27, %s315_s3  ;;  %p317_p5 = pneg %p516_p0 }
  0x18   : > { %s320_s12 = scalar_lea.hbm %s614_s0, 64  ;;  %p321_p4 = scmp.lt.u32.totalorder %s510_s27, %s614_s0 }
  0x19   : > { %p318_p6 = pnand %p317_p5, %p316_p3  ;;  %p322_p10 = scmp.lt.u32.totalorder %s320_s12, %s315_s3 }
  0x1a   : > { %p324_p12 = scmp.lt.u32.totalorder %s315_s3, %s510_s27 }
  0x1b   : > { %p319_p7 = pneg %p318_p6  ;;  %p323_p13 = por %p322_p10, %p321_p4 }
  0x1d   : > { %p325_p1 = por %p324_p12, %p323_p13 }
  0x1f   : > { %p326_p2 = pnand %p325_p1, %p319_p7 }
  0x21   : > { %329 = shalt.err (!%p326_p2)
}
  0x22   : > { %s330_s16 = scalar_lea.vmem %s512_s29, 32  ;;  %s429_s17 = smov [#allocation3]  }
  0x23   : > { %p331_p3 = scmp.ne.s32.totalorder %s512_s29, %s330_s16  ;;  %s335_s22 = sshll.u32 %s429_s17, 4  ;;  %s336_s22 = int_to_ptr.vmem [resolvable:$false] %s335_s22 }
  0x24   : > { %s337_s23 = scalar_lea.vmem %s336_s22, 64  ;;  %p338_p9 = scmp.lt.s32.totalorder %s512_s29, %s336_s22 }
  0x25   : > { %p333_p6 = pnand %p331_p3, %p317_p5  ;;  %p339_p4 = scmp.lt.s32.totalorder %s337_s23, %s330_s16 }
  0x27   : > { %p334_p11 = pneg %p333_p6  ;;  %p340_p10 = por %p339_p4, %p338_p9 }
  0x29   : > { %p341_p12 = pnand %p340_p10, %p334_p11 }
  0x2b   : > { %344 = shalt.err (!%p341_p12)
}
  0x2c   : > { %260 = dma.hbm_to_vmem [thread:$0]  (!%p516_p0), %s510_s27, 32, %s512_s29, %s102_s2  }
  0x2d   : > { %p622_p1 = scmp.lt.s32.totalorder %s427_s11, 3  ;;  %p623_p2 = scmp.ge.s32.totalorder %s427_s11, 1 }
  0x2f   : > { %p119_p5 = pnand %p623_p2, %p622_p1 }
  0x30   : > { %s552_s24 = sand.u32 (!%p119_p5), 1, %s411_s7  }
  0x31   : > { %122 = sbr.rel (%p119_p5) target bundleno = 87 (0x57), region = 24  ;;  %s249_s25 = sshll.u32 (!%p119_p5), %s552_s24, 1 }
  0x32   : > { %s125_s26 = scalar_lea.sflag (!%p119_p5), [#allocation4], %s552_s24  ;;  %s128_s28 = scalar_lea.vmem (!%p119_p5), [#allocation3], %s249_s25 }
  0x38   : > { %398 = dma.done.wait (%p488_p8), %s125_s26, 32  }
  0x39   : > { %400 = vsyncadd (%p488_p8), %s125_s26, 4294967264  ;;  %vm147_vm0 = vcmask 1041408   ;;  %v146_v0 = vld [vmem:[%s128_s28] sm:$0x3]  ;;  %s145_s27 = scalar_lea.vmem [#allocation6], %s552_s24  ;;  %s250_s30 = sshll.u32 %s419_s9, 4 }
  0x3a   : > { %v148_v1 = vsel %vm147_vm0, %v146_v0, 0.0  ;;  %s170_s29 = sshll.u32 %s145_s27, 4  ;;  %s567_s3 = scalar_lea.hbm %s615_s1, %s250_s30  ;;  %s562_s29 = int_to_ptr.vmem [resolvable:$true] %s170_s29 }
  0x3b   : > { %v149_v2 = vrot.slane %v148_v1, 4  ;;  %s158_s4 = scalar_lea.sflag [#allocation5], %s552_s24  ;;  %s345_s5 = scalar_lea.vmem %s562_s29, 16 }
  0x3c   : > { %p346_p8 = scmp.ne.s32.totalorder %s562_s29, %s345_s5  ;;  %p624_p9 = scmp.ne.s32.totalorder %s619_s19, 0 }
  0x3d   : > { %v150_v3 = vadd.f32 %v149_v2, %v148_v1  ;;  %s430_s9 = smov [#allocation6]  }
  0x3e   : > { %p347_p11 = pnand %p346_p8, %p624_p9  ;;  %s349_s12 = sshll.u32 %s430_s9, 4  ;;  %s350_s12 = int_to_ptr.vmem [resolvable:$false] %s349_s12 }
  0x3f   : > { %v151_v4 = vrot.slane %v150_v3, 2  ;;  %s351_s13 = scalar_lea.vmem %s350_s12, 32  ;;  %p352_p7 = scmp.lt.s32.totalorder %s562_s29, %s350_s12 }
  0x40   : > { %p348_p0 = pneg %p347_p11  ;;  %p353_p13 = scmp.lt.s32.totalorder %s351_s13, %s345_s5 }
  0x41   : > { %v152_v5 = vadd.f32 %v151_v4, %v150_v3 }
  0x42   : > { %p354_p3 = por %p353_p13, %p352_p7 }
  0x43   : > { %v153_v6 = vrot.slane %v152_v5, 1 }
  0x44   : > { %p355_p6 = pnand %p354_p3, %p348_p0 }
  0x45   : > { %v154_v7 = vadd.f32 %v153_v6, %v152_v5 }
  0x47   : > { %v155_v8 = vmul.f32 0.125, %v154_v7 }
  0x49   : > { %156 = vst [vmem:[%s145_s27] sm:$0x1] %v155_v8 }
  0x4a   : > { %358 = shalt.err (!%p355_p6)
}
  0x4b   : > { %s359_s15 = scalar_lea.hbm %s567_s3, 16  ;;  %s363_s22 = scalar_lea.hbm %s615_s1, 32 }
  0x4c   : > { %p360_p4 = scmp.ne.s32.totalorder %s567_s3, %s359_s15  ;;  %p364_p1 = scmp.lt.u32.totalorder %s567_s3, %s615_s1 }
  0x4d   : > { %p365_p2 = scmp.lt.u32.totalorder %s363_s22, %s359_s15  ;;  %p367_p8 = scmp.lt.u32.totalorder %s359_s15, %s567_s3 }
  0x4e   : > { %p361_p10 = pnand %p360_p4, %p624_p9 }
  0x4f   : > { %p366_p5 = por %p365_p2, %p364_p1 }
  0x50   : > { %p362_p12 = pneg %p361_p10 }
  0x51   : > { %p368_p11 = por %p367_p8, %p366_p5 }
  0x53   : > { %p369_p0 = pnand %p368_p11, %p362_p12 }
  0x55   : > { %372 = shalt.err (!%p369_p0)
}
  0x56   : > { %255 = dma.vmem_to_hbm [thread:$0]  (%p624_p9), %s562_s29, 16, %s567_s3, %s158_s4  }
  0x57 PF: > { %s182_s25 = sand.u32 1, %s407_s6   ;;  %p625_p7 = scmp.ne.s32.totalorder %s620_s21, 0 }
  0x58   : > { %p626_p13 = scmp.ge.s32.totalorder %s427_s11, 2  ;;  %s183_s26 = scalar_lea.sflag [#allocation5], %s182_s25 }
  0x5a   : > { %p262_p3 = pnand %p626_p13, %p625_p7 }
  0x5c   : > { %402 = dma.done.wait (!%p262_p3), %s183_s26, 16  }
  0x5d   : > { %404 = vsyncadd (!%p262_p3), %s183_s26, 4294967280  ;;  %s17_s11 = sadd.s32 1, %s427_s11   ;;  %s627_s6 = smov %s411_s7 }
  0x5e   : > { %p14_p6 = scmp.ge.s32.totalorder %s17_s11, 4   ;;  %s628_s7 = smov %s415_s8 }
  0x5f   : > { %s629_s8 = smov %s497_s20  ;;  %s630_s9 = smov %s423_s10 }
  0x60   : > { %s631_s10 = smov %s633_s14  ;;  %16 = sbr.rel (!%p14_p6) target bundleno = 6 (0x6), region = 69 }
  0x67   :  { %187 = vsyncpa [#allocation4], 1 }
  0x68   :  { %189 = vsyncpa [#allocation4 + $0x1], 1 }
  0x69   :  { %190 = vsyncpa [#allocation5], 1 }
  0x6a   :  { %192 = vsyncpa [#allocation5 + $0x1], 1 }

</bundles_post_ra>
